<compile_context>
chip_gen: v6e
topology: v6e:2x2x1
jax: 0.10.0
libtpu: 0.0.40
codegen_flags: <defaults>
</compile_context>

<pallas_src>
import jax
import jax.numpy as jnp
from jax import lax
from jax.experimental import pallas as pl
from jax.experimental.pallas import tpu as pltpu


# ----------------------------- Pallas kernels --------------------------------

def _dma_copy_kernel(x_hbm, o_hbm, sem):
    # Identity materialization: one HBM->HBM DMA descriptor, zero compute,
    # zero VMEM.
    cp = pltpu.make_async_copy(x_hbm, o_hbm, sem)
    cp.start()
    cp.wait()


def _dma_copy2_kernel(re_hbm, im_hbm, o_re_hbm, o_im_hbm, sem):
    # Two concurrent HBM->HBM DMAs (real & imaginary planes of a complex state).
    cp_re = pltpu.make_async_copy(re_hbm, o_re_hbm, sem.at[0])
    cp_im = pltpu.make_async_copy(im_hbm, o_im_hbm, sem.at[1])
    cp_re.start()
    cp_im.start()
    cp_re.wait()
    cp_im.wait()


def _pallas_dma_copy(x: jax.Array) -> jax.Array:
    """Fresh copy of `x` via a single HBM->HBM async DMA (no grid, no VMEM)."""
    return pl.pallas_call(
        _dma_copy_kernel,
        out_shape=jax.ShapeDtypeStruct(x.shape, x.dtype),
        in_specs=[pl.BlockSpec(memory_space=pl.ANY)],
        out_specs=pl.BlockSpec(memory_space=pl.ANY),
        scratch_shapes=[pltpu.SemaphoreType.DMA(())],
    )(x)


def _pallas_dma_copy2(re: jax.Array, im: jax.Array):
    """Fresh copies of two planes in one pallas_call (two DMA descriptors)."""
    return pl.pallas_call(
        _dma_copy2_kernel,
        out_shape=(jax.ShapeDtypeStruct(re.shape, re.dtype),
                   jax.ShapeDtypeStruct(im.shape, im.dtype)),
        in_specs=[pl.BlockSpec(memory_space=pl.ANY),
                  pl.BlockSpec(memory_space=pl.ANY)],
        out_specs=(pl.BlockSpec(memory_space=pl.ANY),
                   pl.BlockSpec(memory_space=pl.ANY)),
        scratch_shapes=[pltpu.SemaphoreType.DMA((2,))],
    )(re, im)


# ------------------------------- Wrappers ------------------------------------

def identity_gate_forward(state: jax.Array) -> jax.Array:
    """pyqtorch `I.forward(state)`: returns the state unchanged.

    Matches the PyTorch module exactly (it returns the same tensor) and moves
    zero bytes — the fastest possible implementation on any TPU generation.
    """
    return state


def _copy_real(x: jax.Array) -> jax.Array:
    """DMA copy of a real-dtype array; 8-byte dtypes go through a bit-exact
    uint32 reinterpretation (Mosaic has no 64-bit dtypes)."""
    if x.dtype.itemsize == 8:
        packed = lax.bitcast_convert_type(x, jnp.uint32)   # shape + (2,)
        out = _pallas_dma_copy(packed)
        return lax.bitcast_convert_type(out, x.dtype)
    return _pallas_dma_copy(x)


def identity_gate_forward_materialized(state: jax.Array) -> jax.Array:
    """Identity gate returning a freshly materialized buffer via HBM->HBM DMA.

    Preserves shape and dtype for complex64/complex128 and any real dtype.
    """
    orig_dtype = state.dtype

    if jnp.issubdtype(orig_dtype, jnp.complexfloating):
        # TODO(synk): Mosaic has no complex dtype support; split into real/imag
        # planes in the wrapper (no stack/slice round-trips) and recombine.
        re = jnp.real(state)
        im = jnp.imag(state)
        if re.dtype.itemsize == 8:  # complex128 -> f64 planes -> uint32 words
            re_p = lax.bitcast_convert_type(re, jnp.uint32)
            im_p = lax.bitcast_convert_type(im, jnp.uint32)
            out_re_p, out_im_p = _pallas_dma_copy2(re_p, im_p)
            out_re = lax.bitcast_convert_type(out_re_p, re.dtype)
            out_im = lax.bitcast_convert_type(out_im_p, im.dtype)
        else:
            out_re, out_im = _pallas_dma_copy2(re, im)
        return lax.complex(out_re, out_im).astype(orig_dtype)

    return _copy_real(state)


# --------------------------------- Demo ---------------------------------------

if __name__ == "__main__":
    key = jax.random.PRNGKey(0)
    k1, k2, k3, k4 = jax.random.split(key, 4)

    # pyqtorch statevector layout: (2,)*n_qubits + (batch,)
    n_qubits, batch = 3, 8
    shape = (2,) * n_qubits + (batch,)
    state = (jax.random.normal(k1, shape, dtype=jnp.float32)
             + 1j * jax.random.normal(k2, shape, dtype=jnp.float32)
             ).astype(jnp.complex64)

    # 1) Exact I.forward semantics: zero-copy pass-through.
    out = jax.block_until_ready(identity_gate_forward(state))
    assert out.shape == state.shape and out.dtype == state.dtype
    assert bool(jnp.array_equal(out, state)), "identity pass-through mismatch"

    # 2) Materialized identity: one HBM->HBM DMA per real/imag plane.
    out_m = jax.block_until_ready(identity_gate_forward_materialized(state))
    assert out_m.shape == state.shape and out_m.dtype == jnp.complex64
    assert bool(jnp.array_equal(out_m, state)), "identity DMA copy mismatch"

    # 3) Larger statevector (12 qubits, batch 16 -> 512 KiB complex64) through
    #    the same no-grid DMA path (no VMEM sizing concerns on any chip).
    n_qubits2, batch2 = 12, 16
    shape2 = (2,) * n_qubits2 + (batch2,)
    state2 = (jax.random.normal(k3, shape2, dtype=jnp.float32)
              + 1j * jax.random.normal(k4, shape2, dtype=jnp.float32)
              ).astype(jnp.complex64)
    out2 = jax.block_until_ready(identity_gate_forward_materialized(state2))
    assert out2.shape == state2.shape and out2.dtype == jnp.complex64
    assert bool(jnp.array_equal(out2, state2)), "large identity copy mismatch"

    # 4) Non-complex dtypes route straight through a single DMA copy.
    state_bf16 = jax.random.normal(
        k1, (2, 2, 2, 2, 8), dtype=jnp.float32).astype(jnp.bfloat16)
    out_bf = jax.block_until_ready(
        identity_gate_forward_materialized(state_bf16))
    assert out_bf.shape == state_bf16.shape and out_bf.dtype == jnp.bfloat16
    assert bool(jnp.array_equal(out_bf, state_bf16)), "bf16 identity mismatch"

    print("KERNEL_OK")
</pallas_src>

<mosaic_0001>
module attributes {stable_mosaic.version = 11 : i64} {
  func.func @_dma_copy2_kernel(%arg0: memref<2x2x2x8xf32, #tpu.memory_space<any>>, %arg1: memref<2x2x2x8xf32, #tpu.memory_space<any>>, %arg2: memref<2x2x2x8xf32, #tpu.memory_space<any>>, %arg3: memref<2x2x2x8xf32, #tpu.memory_space<any>>, %arg4: memref<2x!tpu.dma_semaphore, #tpu.memory_space<semaphore_mem>>) attributes {dimension_semantics = [], scalar_prefetch = 0 : i64, scratch_operands = 1 : i64, tpu.core_type = #tpu.core_type<tc>} {
    %c0_i32 = arith.constant 0 : i32
    %0 = tpu.memref_slice %arg4[%c0_i32] : memref<2x!tpu.dma_semaphore, #tpu.memory_space<semaphore_mem>> -> memref<1x!tpu.dma_semaphore, #tpu.memory_space<semaphore_mem>>
    %1 = tpu.memref_squeeze %0 : memref<1x!tpu.dma_semaphore, #tpu.memory_space<semaphore_mem>> -> memref<!tpu.dma_semaphore, #tpu.memory_space<semaphore_mem>>
    tpu.enqueue_dma source(%arg0 : memref<2x2x2x8xf32, #tpu.memory_space<any>>) target(%arg2 : memref<2x2x2x8xf32, #tpu.memory_space<any>>) target_semaphore(%1 : memref<!tpu.dma_semaphore, #tpu.memory_space<semaphore_mem>>)
    %c1_i32 = arith.constant 1 : i32
    %2 = tpu.memref_slice %arg4[%c1_i32] : memref<2x!tpu.dma_semaphore, #tpu.memory_space<semaphore_mem>> -> memref<1x!tpu.dma_semaphore, #tpu.memory_space<semaphore_mem>>
    %3 = tpu.memref_squeeze %2 : memref<1x!tpu.dma_semaphore, #tpu.memory_space<semaphore_mem>> -> memref<!tpu.dma_semaphore, #tpu.memory_space<semaphore_mem>>
    tpu.enqueue_dma source(%arg1 : memref<2x2x2x8xf32, #tpu.memory_space<any>>) target(%arg3 : memref<2x2x2x8xf32, #tpu.memory_space<any>>) target_semaphore(%3 : memref<!tpu.dma_semaphore, #tpu.memory_space<semaphore_mem>>)
    %c0_i32_0 = arith.constant 0 : i32
    %4 = tpu.memref_slice %arg4[%c0_i32_0] : memref<2x!tpu.dma_semaphore, #tpu.memory_space<semaphore_mem>> -> memref<1x!tpu.dma_semaphore, #tpu.memory_space<semaphore_mem>>
    %5 = tpu.memref_squeeze %4 : memref<1x!tpu.dma_semaphore, #tpu.memory_space<semaphore_mem>> -> memref<!tpu.dma_semaphore, #tpu.memory_space<semaphore_mem>>
    tpu.wait_dma2 semaphore(%5 : memref<!tpu.dma_semaphore, #tpu.memory_space<semaphore_mem>>) src(%arg0 : memref<2x2x2x8xf32, #tpu.memory_space<any>>) dst(%arg2 : memref<2x2x2x8xf32, #tpu.memory_space<any>>)
    %c1_i32_1 = arith.constant 1 : i32
    %6 = tpu.memref_slice %arg4[%c1_i32_1] : memref<2x!tpu.dma_semaphore, #tpu.memory_space<semaphore_mem>> -> memref<1x!tpu.dma_semaphore, #tpu.memory_space<semaphore_mem>>
    %7 = tpu.memref_squeeze %6 : memref<1x!tpu.dma_semaphore, #tpu.memory_space<semaphore_mem>> -> memref<!tpu.dma_semaphore, #tpu.memory_space<semaphore_mem>>
    tpu.wait_dma2 semaphore(%7 : memref<!tpu.dma_semaphore, #tpu.memory_space<semaphore_mem>>) src(%arg1 : memref<2x2x2x8xf32, #tpu.memory_space<any>>) dst(%arg3 : memref<2x2x2x8xf32, #tpu.memory_space<any>>)
    return
  }
}

</mosaic_0001>

<bundles_post_ra>
// kernel: tpu_custom_call.1
= control target key start
LH: loop header
LB: loop body
LE: loop exit
PB: predicated region body
PF: predicated region fallthrough
CT: control target
= control target key end

     0   :  { %s54_s12 = smov [#allocation2]   ;;  %s55_s13 = smov 131072   ;;  %s90_s0 = inlined_call_operand.hbm [shape: f32[2,2,2,8], index: 0, kind: input, shape index: {}]   ;;  %s91_s2 = inlined_call_operand.hbm [shape: f32[2,2,2,8], index: 2, kind: output, shape index: {0}]   ;;  %s92_s1 = inlined_call_operand.hbm [shape: f32[2,2,2,8], index: 1, kind: input, shape index: {}]   ;;  %s93_s3 = inlined_call_operand.hbm [shape: f32[2,2,2,8], index: 3, kind: output, shape index: {1}]  }
   0x1   :  { %s56_s14 = smov 0   ;;  %s57_s19 = smov [#allocation2 + $0x1]  }
   0x2   :  { %15 = dma.general %s90_s0, 128, %s91_s2, %s54_s12, %s55_s13, [#allocation4], %s56_s14, 0  }
   0x3   :  { %23 = dma.general %s92_s1, 128, %s93_s3, %s57_s19, %s55_s13, [#allocation6], %s56_s14, 0  }
   0x4   :  { %50 = dma.done.wait [#allocation2], 128 }
   0x5   :  { %51 = vsyncadd [#allocation2], 4294967168 }
   0x6   :  { %52 = dma.done.wait [#allocation2 + $0x1], 128 }
   0x7   :  { %53 = vsyncadd [#allocation2 + $0x1], 4294967168 }
   0x8   :  { %31 = vsyncmov [#allocation2] }
   0xb   :  { %s32_s24 = vpop.sfrf %31 }
   0xc   :  { %p44_p0 = scmp.ne.s32.totalorder %s32_s24, 0 }
   0xe   :  { %36 = shalt.err (%p44_p0)  }
   0xf   :  { %38 = vsyncmov [#allocation2 + $0x1] }
  0x12   :  { %s39_s25 = vpop.sfrf %38 }
  0x13   :  { %p45_p1 = scmp.ne.s32.totalorder %s39_s25, 0 }
  0x15   :  { %43 = shalt.err (%p45_p1)  }

</bundles_post_ra>
